<compile_context>
chip_gen: v5e
topology: v5e:2x2
jax: 0.10.0
libtpu: 0.0.40
codegen_flags: <defaults>
</compile_context>

<pallas_src>
import math

import jax
import jax.numpy as jnp
from jax.experimental import pallas as pl
from jax.experimental.pallas import tpu as pltpu


# ----------------------------------------------------------------------------
# Batch-group size selection.
# ----------------------------------------------------------------------------
def _choose_bt(batch, n_seq):
    """Batch elements per grid step.

    Targets ~128 rows (Bt*N) per MXU pass, but keeps >= 2 grid steps when the
    batch allows it so the 'parallel' axis shards across both TensorCores on
    v7x.  Always returns a divisor of `batch`.
    """
    target = max(1, 128 // max(n_seq, 1))
    bt = max(1, min(batch, target))
    while batch % bt != 0:
        bt -= 1
    if batch // bt < 2 and batch >= 2:
        bt = max(1, bt // 2)
        while batch % bt != 0:
            bt -= 1
    return bt


# ----------------------------------------------------------------------------
# Fused kernel: MLP stack + GatedAttention + classifier for Bt batch elements.
# ----------------------------------------------------------------------------
def _make_fused_kernel(num_hidden, n_seq, hh, scale):
    def kernel(*refs):
        x_ref = refs[0]
        lin_refs = refs[1:1 + 2 * num_hidden]
        (wqkvg_ref, bqkvg_ref, wf_ref, bf_ref,
         wc_ref, bc_ref) = refs[1 + 2 * num_hidden:1 + 2 * num_hidden + 6]
        logits_ref, attw_ref = refs[-2], refs[-1]

        bt = x_ref.shape[0]
        rows = bt * n_seq

        # ---- token-wise MLP stack (Linear + ReLU); weights VMEM-resident ----
        h = x_ref[...].reshape(rows, x_ref.shape[2]).astype(jnp.float32)
        for li in range(num_hidden):
            w = lin_refs[2 * li][...]                      # bf16 (K, H)
            b = lin_refs[2 * li + 1][...]                  # f32  (1, H)
            y = jnp.dot(h.astype(jnp.bfloat16), w,
                        preferred_element_type=jnp.float32)
            h = jnp.maximum(y + b, 0.0)                    # bias + ReLU in f32

        # ---- fused Q/K/V/G projection: one wide MXU pass ----
        qkvg = (jnp.dot(h.astype(jnp.bfloat16), wqkvg_ref[...],
                        preferred_element_type=jnp.float32) + bqkvg_ref[...])
        q = qkvg[:, 0 * hh:1 * hh] * scale                 # scale folded into q
        k = qkvg[:, 1 * hh:2 * hh]
        v = qkvg[:, 2 * hh:3 * hh]
        g = jax.nn.sigmoid(qkvg[:, 3 * hh:4 * hh])

        q3 = q.reshape(bt, n_seq, hh).astype(jnp.bfloat16)
        k3 = k.reshape(bt, n_seq, hh).astype(jnp.bfloat16)
        # scores = q @ k^T (batched trans-b dot_general; no k transpose copy)
        scores = jax.lax.dot_general(
            q3, k3, (((2,), (2,)), ((0,), (0,))),
            preferred_element_type=jnp.float32)            # (Bt, N, N) f32

        m = jnp.max(scores, axis=-1, keepdims=True)
        e = jnp.exp(scores - m)
        # Exact reciprocal: attention_weights are a user-visible output and
        # must sum to 1 per row.
        inv = pl.reciprocal(jnp.sum(e, axis=-1, keepdims=True), approx=False)
        attw = e * inv                                     # (Bt, N, N) f32

        gv = (v * g).reshape(bt, n_seq, hh).astype(jnp.bfloat16)
        ga = jax.lax.dot_general(
            attw.astype(jnp.bfloat16), gv, (((2,), (1,)), ((0,), (0,))),
            preferred_element_type=jnp.float32)            # (Bt, N, Hh)

        pooled = jnp.sum(ga, axis=1)                       # sum over seq axis
        attn_out = (jnp.dot(pooled.astype(jnp.bfloat16), wf_ref[...],
                            preferred_element_type=jnp.float32) + bf_ref[...])
        logits = (jnp.dot(attn_out.astype(jnp.bfloat16), wc_ref[...],
                          preferred_element_type=jnp.float32) + bc_ref[...])
        logits_ref[...] = logits.reshape(logits_ref.shape).astype(logits_ref.dtype)

        # ---- lane-dense attention-weight store ----
        np_cols = attw_ref.shape[-1]
        if np_cols == n_seq:
            attw_ref[...] = attw.astype(attw_ref.dtype)
        else:
            # Scatter the N true columns into 128-padded lanes with a tiny
            # selection matmul (padding lanes are 0; the wrapper slices them
            # off).  Keeps the store a full-lane vst instead of vst.msk.
            sel = (jax.lax.broadcasted_iota(jnp.int32, (n_seq, np_cols), 0) ==
                   jax.lax.broadcasted_iota(jnp.int32, (n_seq, np_cols), 1)
                   ).astype(jnp.float32)
            attw_pad = jnp.dot(attw.reshape(rows, n_seq), sel,
                               preferred_element_type=jnp.float32)
            attw_ref[...] = attw_pad.reshape(bt, n_seq, np_cols).astype(
                attw_ref.dtype)

    return kernel


# ----------------------------------------------------------------------------
# One-time parameter preparation (hoisted out of forward).
# ----------------------------------------------------------------------------
def prepare_params(lin_params, attn_params):
    """Casts weights to bf16, concatenates Q/K/V/G, lane-pads the classifier.

    Call once; reuse the result for every forward call (removes per-call
    convert/pad/concat HBM traffic)."""
    hidden = [(w.astype(jnp.bfloat16), b.reshape(1, -1).astype(jnp.float32))
              for (w, b) in lin_params[:-1]]
    w_last, b_last = lin_params[-1]
    nc = int(w_last.shape[1])
    ncp = ((nc + 127) // 128) * 128                       # lane-dense classes
    wc = jnp.pad(w_last, ((0, 0), (0, ncp - nc))).astype(jnp.bfloat16)
    bc = jnp.pad(b_last.reshape(1, -1),
                 ((0, 0), (0, ncp - nc))).astype(jnp.float32)
    wqkvg = jnp.concatenate(
        [attn_params["wq"], attn_params["wk"],
         attn_params["wv"], attn_params["wg"]], axis=1).astype(jnp.bfloat16)
    bqkvg = jnp.concatenate(
        [attn_params["bq"], attn_params["bk"],
         attn_params["bv"], attn_params["bg"]], axis=1).astype(jnp.float32)
    return {
        "hidden": hidden,
        "wqkvg": wqkvg, "bqkvg": bqkvg,
        "wf": attn_params["wf"].astype(jnp.bfloat16),
        "bf": attn_params["bf"].astype(jnp.float32),
        "wc": wc, "bc": bc,
        "num_classes": nc,
        "attn_hidden": int(attn_params["wq"].shape[1]),
    }


# ----------------------------------------------------------------------------
# MLPPredictor2 forward: one fused pallas_call over batch groups.
# ----------------------------------------------------------------------------
def mlp_predictor2_forward(x, params):
    """x: (B, N, in_channels) f32 -> (logits (B, num_classes) f32,
    attention_weights (B, N, N) f32)."""
    B, N, C = x.shape
    hh = params["attn_hidden"]
    nc = params["num_classes"]
    ncp = int(params["wc"].shape[1])
    hin = int(params["wf"].shape[1])                      # hidden_channels
    npad = ((max(N, 128) + 127) // 128) * 128             # lane-padded attw cols
    scale = 1.0 / math.sqrt(float(hh))

    bt = _choose_bt(B, N)
    grid = (B // bt,)

    operands = [x.astype(jnp.float32)]
    in_specs = [pl.BlockSpec((bt, N, C), lambda i: (i, 0, 0))]
    for (w, b) in params["hidden"]:
        in_specs.append(pl.BlockSpec(w.shape, lambda i: (0, 0)))
        in_specs.append(pl.BlockSpec(b.shape, lambda i: (0, 0)))
        operands += [w, b]
    for name in ("wqkvg", "bqkvg", "wf", "bf", "wc", "bc"):
        a = params[name]
        in_specs.append(pl.BlockSpec(a.shape, lambda i: (0, 0)))
        operands.append(a)

    # ---- advisory cost estimate ----
    mlp_flops = sum(2 * B * N * w.shape[0] * w.shape[1]
                    for w, _ in params["hidden"])
    flops = int(mlp_flops
                + 2 * B * N * hin * 4 * hh                # fused QKVG
                + 4 * B * N * N * hh                      # scores + attw@gv
                + 2 * B * N * N * npad                    # lane-padding matmul
                + 2 * B * hh * hin                        # final_linear
                + 2 * B * hin * ncp)                      # classifier
    transcendentals = int(B * N * (N + hh))               # exp + sigmoid
    weight_bytes = sum(int(a.size) * a.dtype.itemsize for a in operands[1:])
    bytes_accessed = int(B * N * C * 4 + B * ncp * 4 + B * N * npad * 4
                         + weight_bytes)

    # ---- explicit VMEM budget (also fits v7x's 64 MiB) ----
    io_block_bytes = bt * N * C * 4 + bt * ncp * 4 + bt * N * npad * 4
    act_bytes = bt * N * (C + hin + 4 * hh + 3 * N + 2 * hh + npad) * 4
    est = 2 * (weight_bytes + io_block_bytes) + act_bytes
    vmem_limit = int(min(max(3 * est, 32 * 1024 * 1024), 64 * 1024 * 1024))

    logits_pad, attw_pad = pl.pallas_call(
        _make_fused_kernel(len(params["hidden"]), N, hh, scale),
        out_shape=(
            jax.ShapeDtypeStruct((B, 1, ncp), jnp.float32),
            jax.ShapeDtypeStruct((B, N, npad), jnp.float32),
        ),
        grid=grid,
        in_specs=in_specs,
        out_specs=(
            pl.BlockSpec((bt, 1, ncp), lambda i: (i, 0, 0)),
            pl.BlockSpec((bt, N, npad), lambda i: (i, 0, 0)),
        ),
        compiler_params=pltpu.CompilerParams(
            dimension_semantics=("parallel",),
            vmem_limit_bytes=vmem_limit),
        cost_estimate=pl.CostEstimate(
            flops=flops, transcendentals=transcendentals,
            bytes_accessed=bytes_accessed),
    )(*operands)

    return logits_pad[:, 0, :nc], attw_pad[:, :, :N]


# ----------------------------------------------------------------------------
# Deterministic parameter construction (PyTorch-module-equivalent shapes).
# ----------------------------------------------------------------------------
def make_params(key, in_channels, hidden_channels, num_classes, num_layers,
                attn_hidden=128):
    keys = jax.random.split(key, 16)
    ki = iter(range(16))

    def lin(k, fan_in, fan_out):
        kw, kb = jax.random.split(k)
        w = jax.random.normal(kw, (fan_in, fan_out), jnp.float32) * (
            1.0 / (fan_in ** 0.5))
        b = jax.random.normal(kb, (fan_out,), jnp.float32) * 0.01
        return w, b

    lin_params = [lin(keys[next(ki)], in_channels, hidden_channels)]
    for _ in range(num_layers - 2):
        lin_params.append(lin(keys[next(ki)], hidden_channels, hidden_channels))
    lin_params.append(lin(keys[next(ki)], hidden_channels, num_classes))

    wq, bq = lin(keys[next(ki)], hidden_channels, attn_hidden)
    wk, bk = lin(keys[next(ki)], hidden_channels, attn_hidden)
    wv, bv = lin(keys[next(ki)], hidden_channels, attn_hidden)
    wg, bg = lin(keys[next(ki)], hidden_channels, attn_hidden)
    wf, bf = lin(keys[next(ki)], attn_hidden, hidden_channels)
    attn_params = {
        "wq": wq, "bq": bq.reshape(1, -1),
        "wk": wk, "bk": bk.reshape(1, -1),
        "wv": wv, "bv": bv.reshape(1, -1),
        "wg": wg, "bg": bg.reshape(1, -1),
        "wf": wf, "bf": bf.reshape(1, -1),
    }
    return lin_params, attn_params


if __name__ == "__main__":
    # Small shapes consistent with the module.
    B, N = 2, 8
    in_channels, hidden_channels, num_classes, num_layers = 16, 32, 4, 3
    dropout = 0.5  # identity at inference

    key = jax.random.PRNGKey(0)
    kx, kp = jax.random.split(key)
    x = jax.random.normal(kx, (B, N, in_channels), jnp.float32)

    lin_params, attn_params = make_params(
        kp, in_channels, hidden_channels, num_classes, num_layers)

    # One-time weight preparation (hoisted out of the forward pass).
    params = prepare_params(lin_params, attn_params)

    logits, attw = mlp_predictor2_forward(x, params)
    jax.block_until_ready((logits, attw))

    assert logits.shape == (B, num_classes)
    assert attw.shape == (B, N, N)
    print("KERNEL_OK")
</pallas_src>

<mosaic_0001>
module attributes {stable_mosaic.version = 11 : i64} {
  func.func @kernel(%arg0: i32, %arg1: memref<1x8x16xf32, #tpu.memory_space<vmem>>, %arg2: memref<16x32xbf16, #tpu.memory_space<vmem>>, %arg3: memref<1x32xf32, #tpu.memory_space<vmem>>, %arg4: memref<32x32xbf16, #tpu.memory_space<vmem>>, %arg5: memref<1x32xf32, #tpu.memory_space<vmem>>, %arg6: memref<32x512xbf16, #tpu.memory_space<vmem>>, %arg7: memref<1x512xf32, #tpu.memory_space<vmem>>, %arg8: memref<128x32xbf16, #tpu.memory_space<vmem>>, %arg9: memref<1x32xf32, #tpu.memory_space<vmem>>, %arg10: memref<32x128xbf16, #tpu.memory_space<vmem>>, %arg11: memref<1x128xf32, #tpu.memory_space<vmem>>, %arg12: memref<1x1x128xf32, #tpu.memory_space<vmem>>, %arg13: memref<1x8x128xf32, #tpu.memory_space<vmem>>) attributes {dimension_semantics = [#tpu.dimension_semantics<parallel>], iteration_bounds = array<i64: 2>, scalar_prefetch = 0 : i64, scratch_operands = 0 : i64, tpu.core_type = #tpu.core_type<tc>, window_params = [{transform_indices = @transform_0, window_bounds = array<i64: 1, 8, 16>}, {pipeline_mode = #tpu.pipeline_mode<synchronous>, transform_indices = @transform_1, window_bounds = array<i64: 16, 32>}, {pipeline_mode = #tpu.pipeline_mode<synchronous>, transform_indices = @transform_2, window_bounds = array<i64: 1, 32>}, {pipeline_mode = #tpu.pipeline_mode<synchronous>, transform_indices = @transform_3, window_bounds = array<i64: 32, 32>}, {pipeline_mode = #tpu.pipeline_mode<synchronous>, transform_indices = @transform_4, window_bounds = array<i64: 1, 32>}, {pipeline_mode = #tpu.pipeline_mode<synchronous>, transform_indices = @transform_5, window_bounds = array<i64: 32, 512>}, {pipeline_mode = #tpu.pipeline_mode<synchronous>, transform_indices = @transform_6, window_bounds = array<i64: 1, 512>}, {pipeline_mode = #tpu.pipeline_mode<synchronous>, transform_indices = @transform_7, window_bounds = array<i64: 128, 32>}, {pipeline_mode = #tpu.pipeline_mode<synchronous>, transform_indices = @transform_8, window_bounds = array<i64: 1, 32>}, {pipeline_mode = #tpu.pipeline_mode<synchronous>, transform_indices = @transform_9, window_bounds = array<i64: 32, 128>}, {pipeline_mode = #tpu.pipeline_mode<synchronous>, transform_indices = @transform_10, window_bounds = array<i64: 1, 128>}, {transform_indices = @transform_11, window_bounds = array<i64: 1, 1, 128>}, {transform_indices = @transform_12, window_bounds = array<i64: 1, 8, 128>}]} {
    %c0 = arith.constant 0 : index
    %c0_0 = arith.constant 0 : index
    %c0_1 = arith.constant 0 : index
    %0 = vector.load %arg1[%c0, %c0_0, %c0_1] : memref<1x8x16xf32, #tpu.memory_space<vmem>>, vector<1x8x16xf32>
    %1 = vector.shape_cast %0 : vector<1x8x16xf32> to vector<8x16xf32>
    %c0_2 = arith.constant 0 : index
    %c0_3 = arith.constant 0 : index
    %2 = vector.load %arg2[%c0_2, %c0_3] : memref<16x32xbf16, #tpu.memory_space<vmem>>, vector<16x32xbf16>
    %c0_4 = arith.constant 0 : index
    %c0_5 = arith.constant 0 : index
    %3 = vector.load %arg3[%c0_4, %c0_5] : memref<1x32xf32, #tpu.memory_space<vmem>>, vector<1x32xf32>
    %4 = arith.truncf %1 : vector<8x16xf32> to vector<8x16xbf16>
    %cst = arith.constant dense<0.000000e+00> : vector<8x32xf32>
    %5 = tpu.matmul %4, %2, %cst {dimension_numbers = #tpu.dot_dimension_numbers<[1], [0], [0], [1], [0, 0, 1, 1], [], []>} : vector<8x16xbf16>, vector<16x32xbf16>, vector<8x32xf32> -> vector<8x32xf32>
    %6 = vector.broadcast %3 : vector<1x32xf32> to vector<8x32xf32>
    %7 = arith.addf %5, %6 : vector<8x32xf32>
    %cst_6 = arith.constant 0.000000e+00 : f32
    %8 = vector.broadcast %cst_6 : f32 to vector<8x32xf32>
    %9 = arith.maximumf %7, %8 : vector<8x32xf32>
    %c0_7 = arith.constant 0 : index
    %c0_8 = arith.constant 0 : index
    %10 = vector.load %arg4[%c0_7, %c0_8] : memref<32x32xbf16, #tpu.memory_space<vmem>>, vector<32x32xbf16>
    %c0_9 = arith.constant 0 : index
    %c0_10 = arith.constant 0 : index
    %11 = vector.load %arg5[%c0_9, %c0_10] : memref<1x32xf32, #tpu.memory_space<vmem>>, vector<1x32xf32>
    %12 = arith.truncf %9 : vector<8x32xf32> to vector<8x32xbf16>
    %cst_11 = arith.constant dense<0.000000e+00> : vector<8x32xf32>
    %13 = tpu.matmul %12, %10, %cst_11 {dimension_numbers = #tpu.dot_dimension_numbers<[1], [0], [0], [1], [0, 0, 1, 1], [], []>} : vector<8x32xbf16>, vector<32x32xbf16>, vector<8x32xf32> -> vector<8x32xf32>
    %14 = vector.broadcast %11 : vector<1x32xf32> to vector<8x32xf32>
    %15 = arith.addf %13, %14 : vector<8x32xf32>
    %cst_12 = arith.constant 0.000000e+00 : f32
    %16 = vector.broadcast %cst_12 : f32 to vector<8x32xf32>
    %17 = arith.maximumf %15, %16 : vector<8x32xf32>
    %18 = arith.truncf %17 : vector<8x32xf32> to vector<8x32xbf16>
    %c0_13 = arith.constant 0 : index
    %c0_14 = arith.constant 0 : index
    %19 = vector.load %arg6[%c0_13, %c0_14] : memref<32x512xbf16, #tpu.memory_space<vmem>>, vector<32x512xbf16>
    %cst_15 = arith.constant dense<0.000000e+00> : vector<8x512xf32>
    %20 = tpu.matmul %18, %19, %cst_15 {dimension_numbers = #tpu.dot_dimension_numbers<[1], [0], [0], [1], [0, 0, 1, 1], [], []>} : vector<8x32xbf16>, vector<32x512xbf16>, vector<8x512xf32> -> vector<8x512xf32>
    %c0_16 = arith.constant 0 : index
    %c0_17 = arith.constant 0 : index
    %21 = vector.load %arg7[%c0_16, %c0_17] : memref<1x512xf32, #tpu.memory_space<vmem>>, vector<1x512xf32>
    %22 = vector.broadcast %21 : vector<1x512xf32> to vector<8x512xf32>
    %23 = arith.addf %20, %22 : vector<8x512xf32>
    %24 = vector.extract_strided_slice %23 {offsets = [0, 0], sizes = [8, 128], strides = [1, 1]} : vector<8x512xf32> to vector<8x128xf32>
    %cst_18 = arith.constant 0.0883883461 : f32
    %25 = vector.broadcast %cst_18 : f32 to vector<8x128xf32>
    %26 = arith.mulf %24, %25 : vector<8x128xf32>
    %27 = vector.extract_strided_slice %23 {offsets = [0, 128], sizes = [8, 128], strides = [1, 1]} : vector<8x512xf32> to vector<8x128xf32>
    %28 = vector.extract_strided_slice %23 {offsets = [0, 256], sizes = [8, 128], strides = [1, 1]} : vector<8x512xf32> to vector<8x128xf32>
    %29 = vector.extract_strided_slice %23 {offsets = [0, 384], sizes = [8, 128], strides = [1, 1]} : vector<8x512xf32> to vector<8x128xf32>
    %30 = arith.negf %29 : vector<8x128xf32>
    %31 = math.exp %30 : vector<8x128xf32>
    %cst_19 = arith.constant 1.000000e+00 : f32
    %32 = vector.broadcast %cst_19 : f32 to vector<8x128xf32>
    %33 = arith.addf %32, %31 : vector<8x128xf32>
    %34 = arith.divf %32, %33 : vector<8x128xf32>
    %35 = vector.shape_cast %26 : vector<8x128xf32> to vector<1x8x128xf32>
    %36 = arith.truncf %35 : vector<1x8x128xf32> to vector<1x8x128xbf16>
    %37 = vector.shape_cast %27 : vector<8x128xf32> to vector<1x8x128xf32>
    %38 = arith.truncf %37 : vector<1x8x128xf32> to vector<1x8x128xbf16>
    %cst_20 = arith.constant dense<0.000000e+00> : vector<1x8x8xf32>
    %39 = tpu.matmul %36, %38, %cst_20 {dimension_numbers = #tpu.dot_dimension_numbers<[2], [2], [1], [1], [0, 0, 0, 1, 1, 1], [0], [0]>} : vector<1x8x128xbf16>, vector<1x8x128xbf16>, vector<1x8x8xf32> -> vector<1x8x8xf32>
    %cst_21 = arith.constant dense<0xFF800000> : vector<1x8xf32>
    %40 = vector.multi_reduction <maximumf>, %39, %cst_21 [2] : vector<1x8x8xf32> to vector<1x8xf32>
    %41 = vector.shape_cast %40 : vector<1x8xf32> to vector<1x8x1xf32>
    %42 = vector.broadcast %41 : vector<1x8x1xf32> to vector<1x8x8xf32>
    %43 = arith.subf %39, %42 : vector<1x8x8xf32>
    %44 = math.exp %43 : vector<1x8x8xf32>
    %cst_22 = arith.constant dense<0.000000e+00> : vector<1x8xf32>
    %45 = vector.multi_reduction <add>, %44, %cst_22 [2] : vector<1x8x8xf32> to vector<1x8xf32>
    %46 = vector.shape_cast %45 : vector<1x8xf32> to vector<1x8x1xf32>
    %47 = tpu.reciprocal %46 : vector<1x8x1xf32> -> vector<1x8x1xf32>
    %48 = vector.broadcast %47 : vector<1x8x1xf32> to vector<1x8x8xf32>
    %49 = arith.mulf %44, %48 : vector<1x8x8xf32>
    %50 = arith.mulf %28, %34 : vector<8x128xf32>
    %51 = vector.shape_cast %50 : vector<8x128xf32> to vector<1x8x128xf32>
    %52 = arith.truncf %51 : vector<1x8x128xf32> to vector<1x8x128xbf16>
    %53 = arith.truncf %49 : vector<1x8x8xf32> to vector<1x8x8xbf16>
    %cst_23 = arith.constant dense<0.000000e+00> : vector<1x8x128xf32>
    %54 = tpu.matmul %53, %52, %cst_23 {dimension_numbers = #tpu.dot_dimension_numbers<[2], [1], [1], [2], [0, 0, 0, 1, 1, 2], [0], [0]>} : vector<1x8x8xbf16>, vector<1x8x128xbf16>, vector<1x8x128xf32> -> vector<1x8x128xf32>
    %cst_24 = arith.constant dense<0.000000e+00> : vector<1x128xf32>
    %55 = vector.multi_reduction <add>, %54, %cst_24 [1] : vector<1x8x128xf32> to vector<1x128xf32>
    %56 = arith.truncf %55 : vector<1x128xf32> to vector<1x128xbf16>
    %c0_25 = arith.constant 0 : index
    %c0_26 = arith.constant 0 : index
    %57 = vector.load %arg8[%c0_25, %c0_26] : memref<128x32xbf16, #tpu.memory_space<vmem>>, vector<128x32xbf16>
    %cst_27 = arith.constant dense<0.000000e+00> : vector<1x32xf32>
    %58 = tpu.matmul %56, %57, %cst_27 {dimension_numbers = #tpu.dot_dimension_numbers<[1], [0], [0], [1], [0, 0, 1, 1], [], []>} : vector<1x128xbf16>, vector<128x32xbf16>, vector<1x32xf32> -> vector<1x32xf32>
    %c0_28 = arith.constant 0 : index
    %c0_29 = arith.constant 0 : index
    %59 = vector.load %arg9[%c0_28, %c0_29] : memref<1x32xf32, #tpu.memory_space<vmem>>, vector<1x32xf32>
    %60 = arith.addf %58, %59 : vector<1x32xf32>
    %61 = arith.truncf %60 : vector<1x32xf32> to vector<1x32xbf16>
    %c0_30 = arith.constant 0 : index
    %c0_31 = arith.constant 0 : index
    %62 = vector.load %arg10[%c0_30, %c0_31] : memref<32x128xbf16, #tpu.memory_space<vmem>>, vector<32x128xbf16>
    %cst_32 = arith.constant dense<0.000000e+00> : vector<1x128xf32>
    %63 = tpu.matmul %61, %62, %cst_32 {dimension_numbers = #tpu.dot_dimension_numbers<[1], [0], [0], [1], [0, 0, 1, 1], [], []>} : vector<1x32xbf16>, vector<32x128xbf16>, vector<1x128xf32> -> vector<1x128xf32>
    %c0_33 = arith.constant 0 : index
    %c0_34 = arith.constant 0 : index
    %64 = vector.load %arg11[%c0_33, %c0_34] : memref<1x128xf32, #tpu.memory_space<vmem>>, vector<1x128xf32>
    %65 = arith.addf %63, %64 : vector<1x128xf32>
    %66 = vector.shape_cast %65 : vector<1x128xf32> to vector<1x1x128xf32>
    %c0_35 = arith.constant 0 : index
    %c0_36 = arith.constant 0 : index
    %c0_37 = arith.constant 0 : index
    %67 = vector.load %arg12[%c0_35, %c0_36, %c0_37] : memref<1x1x128xf32, #tpu.memory_space<vmem>>, vector<1x1x128xf32>
    tpu.vector_store %arg12[%c0_35, %c0_36, %c0_37], %66 {strides = array<i32>} : memref<1x1x128xf32, #tpu.memory_space<vmem>>, vector<1x1x128xf32>,
    %68 = tpu.iota {dimensions = array<i32: 0>} : vector<8x128xi32>
    %69 = tpu.iota {dimensions = array<i32: 1>} : vector<8x128xi32>
    %70 = arith.cmpi eq, %68, %69 : vector<8x128xi32>
    %71 = arith.extui %70 : vector<8x128xi1> to vector<8x128xi32>
    %72 = arith.sitofp %71 : vector<8x128xi32> to vector<8x128xf32>
    %73 = vector.shape_cast %49 : vector<1x8x8xf32> to vector<8x8xf32>
    %cst_38 = arith.constant dense<0.000000e+00> : vector<8x128xf32>
    %74 = tpu.matmul %73, %72, %cst_38 {dimension_numbers = #tpu.dot_dimension_numbers<[1], [0], [0], [1], [0, 0, 1, 1], [], []>} : vector<8x8xf32>, vector<8x128xf32>, vector<8x128xf32> -> vector<8x128xf32>
    %75 = vector.shape_cast %74 : vector<8x128xf32> to vector<1x8x128xf32>
    %c0_39 = arith.constant 0 : index
    %c0_40 = arith.constant 0 : index
    %c0_41 = arith.constant 0 : index
    %76 = vector.load %arg13[%c0_39, %c0_40, %c0_41] : memref<1x8x128xf32, #tpu.memory_space<vmem>>, vector<1x8x128xf32>
    tpu.vector_store %arg13[%c0_39, %c0_40, %c0_41], %75 {strides = array<i32>} : memref<1x8x128xf32, #tpu.memory_space<vmem>>, vector<1x8x128xf32>,
    return
  }
  func.func @transform_0(%arg0: i32) -> (i32, i32, i32) {
    %c0_i32 = arith.constant 0 : i32
    %c0_i32_0 = arith.constant 0 : i32
    %c0_i32_1 = arith.constant 0 : i32
    return %arg0, %c0_i32, %c0_i32_0 : i32, i32, i32
  }
  func.func @transform_1(%arg0: i32) -> (i32, i32) {
    %c0_i32 = arith.constant 0 : i32
    %c0_i32_0 = arith.constant 0 : i32
    %c0_i32_1 = arith.constant 0 : i32
    return %c0_i32, %c0_i32_0 : i32, i32
  }
  func.func @transform_2(%arg0: i32) -> (i32, i32) {
    %c0_i32 = arith.constant 0 : i32
    %c0_i32_0 = arith.constant 0 : i32
    %c0_i32_1 = arith.constant 0 : i32
    return %c0_i32, %c0_i32_0 : i32, i32
  }
  func.func @transform_3(%arg0: i32) -> (i32, i32) {
    %c0_i32 = arith.constant 0 : i32
    %c0_i32_0 = arith.constant 0 : i32
    %c0_i32_1 = arith.constant 0 : i32
    return %c0_i32, %c0_i32_0 : i32, i32
  }
  func.func @transform_4(%arg0: i32) -> (i32, i32) {
    %c0_i32 = arith.constant 0 : i32
    %c0_i32_0 = arith.constant 0 : i32
    %c0_i32_1 = arith.constant 0 : i32
    return %c0_i32, %c0_i32_0 : i32, i32
  }
  func.func @transform_5(%arg0: i32) -> (i32, i32) {
    %c0_i32 = arith.constant 0 : i32
    %c0_i32_0 = arith.constant 0 : i32
    %c0_i32_1 = arith.constant 0 : i32
    return %c0_i32, %c0_i32_0 : i32, i32
  }
  func.func @transform_6(%arg0: i32) -> (i32, i32) {
    %c0_i32 = arith.constant 0 : i32
    %c0_i32_0 = arith.constant 0 : i32
    %c0_i32_1 = arith.constant 0 : i32
    return %c0_i32, %c0_i32_0 : i32, i32
  }
  func.func @transform_7(%arg0: i32) -> (i32, i32) {
    %c0_i32 = arith.constant 0 : i32
    %c0_i32_0 = arith.constant 0 : i32
    %c0_i32_1 = arith.constant 0 : i32
    return %c0_i32, %c0_i32_0 : i32, i32
  }
  func.func @transform_8(%arg0: i32) -> (i32, i32) {
    %c0_i32 = arith.constant 0 : i32
    %c0_i32_0 = arith.constant 0 : i32
    %c0_i32_1 = arith.constant 0 : i32
    return %c0_i32, %c0_i32_0 : i32, i32
  }
  func.func @transform_9(%arg0: i32) -> (i32, i32) {
    %c0_i32 = arith.constant 0 : i32
    %c0_i32_0 = arith.constant 0 : i32
    %c0_i32_1 = arith.constant 0 : i32
    return %c0_i32, %c0_i32_0 : i32, i32
  }
  func.func @transform_10(%arg0: i32) -> (i32, i32) {
    %c0_i32 = arith.constant 0 : i32
    %c0_i32_0 = arith.constant 0 : i32
    %c0_i32_1 = arith.constant 0 : i32
    return %c0_i32, %c0_i32_0 : i32, i32
  }
  func.func @transform_11(%arg0: i32) -> (i32, i32, i32) {
    %c0_i32 = arith.constant 0 : i32
    %c0_i32_0 = arith.constant 0 : i32
    %c0_i32_1 = arith.constant 0 : i32
    return %arg0, %c0_i32, %c0_i32_0 : i32, i32, i32
  }
  func.func @transform_12(%arg0: i32) -> (i32, i32, i32) {
    %c0_i32 = arith.constant 0 : i32
    %c0_i32_0 = arith.constant 0 : i32
    %c0_i32_1 = arith.constant 0 : i32
    return %arg0, %c0_i32, %c0_i32_0 : i32, i32, i32
  }
}

</mosaic_0001>

<bundles_post_ra>
// kernel: tpu_custom_call.1
= control target key start
LH: loop header
LB: loop body
LE: loop exit
PB: predicated region body
PF: predicated region fallthrough
CT: control target
= control target key end

     0   :  { %s1912_s0 = inlined_call_operand.vmem [shape: f32[2,8,16], index: 0, kind: input, shape index: {}]   ;;  %s1913_s1 = inlined_call_operand.hbm [shape: bf16[16,32], index: 1, kind: input, shape index: {}]   ;;  %s1914_s2 = inlined_call_operand.hbm [shape: f32[1,32], index: 2, kind: input, shape index: {}]   ;;  %s1915_s3 = inlined_call_operand.hbm [shape: bf16[32,32], index: 3, kind: input, shape index: {}]   ;;  %s1916_s4 = inlined_call_operand.hbm [shape: f32[1,32], index: 4, kind: input, shape index: {}]   ;;  %s1917_s5 = inlined_call_operand.vmem [shape: bf16[32,512], index: 5, kind: input, shape index: {}]   ;;  %s1918_s6 = inlined_call_operand.vmem [shape: f32[1,512], index: 6, kind: input, shape index: {}]   ;;  %s1919_s7 = inlined_call_operand.vmem [shape: bf16[128,32], index: 7, kind: input, shape index: {}]   ;;  %s1920_s8 = inlined_call_operand.vmem [shape: f32[1,32], index: 8, kind: input, shape index: {}]   ;;  %s1921_s9 = inlined_call_operand.hbm [shape: bf16[32,128], index: 9, kind: input, shape index: {}]   ;;  %s1922_s10 = inlined_call_operand.vmem [shape: f32[1,128], index: 10, kind: input, shape index: {}]   ;;  %s1923_s11 = inlined_call_operand.hbm [shape: f32[2,1,128], index: 11, kind: output, shape index: {0}]   ;;  %s1924_s12 = inlined_call_operand.hbm [shape: f32[2,8,128], index: 12, kind: output, shape index: {1}]  }
   0x1   :  { %1930 = sst [smem:[#allocation24_spill]] %s1913_s1 }
   0x2   :  { %1931 = sst [smem:[#allocation25_spill]] %s1914_s2 }
   0x3   :  { %1932 = sst [smem:[#allocation26_spill]] %s1916_s4 }
   0x4   :  { %18 = vsyncpa [#allocation3], 0 }
   0x5   :  { %19 = vsyncpa [#allocation6], 0 }
   0x6   :  { %20 = vsyncpa [#allocation9], 0 }
   0x7   :  { %21 = vsyncpa [#allocation4], 0 }
   0x8   :  { %23 = vsyncpa [#allocation4 + $0x1], 0 }
   0x9   :  { %24 = vsyncpa [#allocation13], 0 }
   0xa   :  { %26 = vsyncpa [#allocation13 + $0x1], 0  ;;  %s1664_s21 = smov 0   ;;  %s1666_s22 = smov 0  }
   0xb   :  { %s1668_s23 = smov 0   ;;  %s1670_s24 = smov 0  }
   0xc LB: > { %1933 = sst [smem:[#allocation19_spill]] %s1577_s21  ;;  %s1685_s25 = sadd.s32 4294967295, %s1589_s24   ;;  %s1589_s24 = sphi %s1670_s24, %s1947_s24   ;;  %s1585_s23 = sphi %s1668_s23, %s1949_s23   ;;  %s1581_s22 = sphi %s1666_s22, %s1951_s22   ;;  %s1577_s21 = sphi %s1664_s21, %s1950_s21  }
   0xd   : > { %1934 = sst [smem:[#allocation20_spill]] %s1585_s23  ;;  %s1088_s26 = sadd.s32 4294967294, %s1589_s24  }
   0xe   : > { %s1689_s27 = sadd.s32 1, %s1589_s24   ;;  %s275_s28 = sadd.s32 1, %s1585_s23 }
   0xf   : > { %1935 = sst [smem:[#allocation21_spill]] %s1689_s27  ;;  %s272_s29 = ssub.s32 %s1589_s24, %s1689_s27 }
  0x10   : > { %p285_p0 = scmp.ne.s32.totalorder %s1585_s23, %s1581_s22  ;;  %p273_p1 = scmp.eq.s32.totalorder %s272_s29, 0 }
  0x11   : > { %p286_p2 = scmp.eq.s32.totalorder %s1685_s25, 1  ;;  %p291_p3 = scmp.ne.s32.totalorder %s1581_s22, %s1577_s21 }
  0x12   : > { %p292_p4 = scmp.eq.s32.totalorder %s1088_s26, 1  ;;  %p1089_p7 = scmp.ge.s32.totalorder %s1589_s24, 1 }
  0x13   : > { %s1700_s30 = scalar_select %p273_p1, %s1585_s23, %s275_s28  }
  0x14   : > { %p1702_p5 = por %p286_p2, %p285_p0  ;;  %p1706_p6 = por %p292_p4, %p291_p3 }
  0x15   : > { %1936 = sst [smem:[#allocation22_spill]] %s1700_s30  ;;  %p325_p8 = scmp.lt.s32.totalorder %s1589_s24, 3 }
  0x16   : > { %s1938_s14 = scalar_select %p1706_p6, 1, 0 }
  0x17   : > { %p1272_p9 = scmp.eq.s32.totalorder %s1685_s25, 0  ;;  %p1713_p10 = pnand %p1089_p7, %p325_p8 }
  0x18   : > { %1939 = sst [smem:[#allocation23_spill]] %s1938_s14  ;;  %s1591_s19 = smov [#allocation5]  }
  0x19   : > { %s1941_s2 = sld [smem:[#allocation25_spill]]  ;;  %p1249_p11 = pneg %p1713_p10 }
  0x1a   : > { %s353_s20 = sshll.u32 %s1591_s19, 4  ;;  %s1942_s4 = sld [smem:[#allocation26_spill]]  ;;  %s354_s20 = int_to_ptr.vmem [resolvable:$true] %s353_s20 }
  0x1b   : > { %p1727_p12 = pnand %p1272_p9, %p1249_p11  ;;  %s1944_s1 = sld [smem:[#allocation24_spill]] }
  0x1c   : > { %s1592_s23 = smov [#allocation8]   ;;  %s1593_s26 = smov [#allocation2]  }
  0x1d   : > { %s379_s19 = sshll.u32 %s1592_s23, 4  ;;  %s338_s28 = sshll.u32 %s1593_s26, 4  ;;  %s380_s19 = int_to_ptr.vmem [resolvable:$true] %s379_s19  ;;  %s339_s28 = int_to_ptr.vmem [resolvable:$true] %s338_s28 }
  0x1e   : > { %s362_s14 = sshll.u32 %s1915_s3, 4  ;;  %s1594_s21 = smov 64   ;;  %s363_s14 = int_to_ptr.hbm [resolvable:$true] %s362_s14 }
  0x1f   : > { %s351_s18 = sshll.u32 %s1941_s2, 4  ;;  %s1595_s16 = smov 4   ;;  %s352_s18 = int_to_ptr.hbm [resolvable:$true] %s351_s18 }
  0x20   : > { %s377_s29 = sshll.u32 %s1942_s4, 4  ;;  %s1596_s23 = smov [#allocation7]   ;;  %s378_s29 = int_to_ptr.hbm [resolvable:$true] %s377_s29 }
  0x21   : > { %s336_s2 = sshll.u32 %s1944_s1, 4  ;;  %s400_s1 = sshll.u32 %s1921_s9, 4  ;;  %s337_s2 = int_to_ptr.hbm [resolvable:$true] %s336_s2  ;;  %s401_s1 = int_to_ptr.hbm [resolvable:$true] %s400_s1 }
  0x22   : > { %1255 = dma.hbm_to_vmem [thread:$0]  (!%p1727_p12), %s352_s18, 16, %s354_s20, [#allocation6]  }
  0x23   : > { %1261 = dma.hbm_to_vmem [thread:$0]  (!%p1727_p12), %s378_s29, 16, %s380_s19, [#allocation9]  }
  0x24   : > { %1252 = dma.hbm_to_vmem [thread:$0]  (!%p1727_p12), %s337_s2, 128, %s339_s28, [#allocation3], %s1594_s21, %s1594_s21, %s1595_s16  }
  0x25   : > { %s364_s18 = sshll.u32 %s1596_s23, 4  ;;  %s1597_s29 = smov [#allocation10]   ;;  %s365_s18 = int_to_ptr.vmem [resolvable:$true] %s364_s18 }
  0x26   : > { %1258 = dma.hbm_to_vmem [thread:$0]  (!%p1727_p12), %s363_s14, 256, %s365_s18, [#allocation6], %s1594_s21, %s1594_s21, %s1595_s16  }
  0x27   : > { %s402_s19 = sshll.u32 %s1597_s29, 4  ;;  %428 = sbr.rel (%p1713_p10) target bundleno = 1279 (0x4ff), region = 64  ;;  %s403_s19 = int_to_ptr.vmem [resolvable:$true] %s402_s19 }
  0x28   : > { %1264 = dma.hbm_to_vmem [thread:$0]  (!%p1727_p12), %s401_s1, 256, %s403_s19, [#allocation9], %s1594_s21, %s1594_s21, %s1595_s16  }
  0x2c   : > { %1556 = dma.done.wait (%p1272_p9), [#allocation3], 128  }
  0x2d   : > { %1558 = vsyncadd (%p1272_p9), [#allocation3], 4294967168 }
  0x2e   : > { %1560 = dma.done.wait (%p1272_p9), [#allocation6], 272  }
  0x2f   : > { %1562 = vsyncadd (%p1272_p9), [#allocation6], 4294967024 }
  0x30   : > { %1564 = dma.done.wait (%p1272_p9), [#allocation9], 272  }
  0x31   : > { %1566 = vsyncadd (%p1272_p9), [#allocation9], 4294967024  ;;  %p494_p13 = scmp.lt.s32.totalorder %s1685_s25, 1  ;;  %v1204_v0 = vld [vmem:[#allocation2] sm:$0xff]  ;;  %vm513_vm0 = vcmask 130048   ;;  %v1206_v3 = vld [vmem:[#allocation7 + $0x8] sm:$0xff] }
  0x32   : > { %524 = vmatpush.bf16.msra.mxu3 %v1204_v0  ;;  %562 = vmatpush.bf16.msra.mxu1 %v1206_v3  ;;  %v1205_v4 = vld [vmem:[#allocation7] sm:$0xff]  ;;  %v1323_v5 = vld [vmem:[#allocation5] ss:$0 sm:$0xff]  ;;  %vm552_vm1 = vcmask 261120   ;;  %v1136_v11 = vld [vmem:[%s1917_s5 + $0x20] sm:$0xf] }
  0x33   : > { %s495_s1 = scalar_select %p494_p13, %s1685_s25, 1  ;;  %v1213_v12 = vld [vmem:[%s1917_s5 + $0x2c] sm:$0xf0]  ;;  %v1211_v13 = vld [vmem:[%s1917_s5 + $0x24] sm:$0xf]  ;;  %vm750_vm6 = vcmask 1043456  }
  0x34   : > { %v1137_v14 = vor.u32 %v1213_v12, %v1136_v11  ;;  %v1138_v15 = vld [vmem:[%s1917_s5 + $0x30] sm:$0xf0]  ;;  %v1144_v16 = vld [vmem:[%s1917_s5 + $0x28] sm:$0xf]  ;;  %v1214_v17 = vld [vmem:[%s1917_s5 + $0x34] sm:$0xf0] }
  0x35   : > { %s1103_s2 = sshll.u32 %s495_s1, 3  ;;  %v1141_v18 = vor.u32 %v1211_v13, %v1138_v15  ;;  %v1145_v19 = vor.u32 %v1214_v17, %v1144_v16  ;;  %v1212_v20 = vld [vmem:[%s1917_s5 + $0x2c] sm:$0xf]  ;;  %v1146_v21 = vld [vmem:[%s1917_s5 + $0x38] sm:$0xf0]  ;;  %vm719_vm7 = vcmask 64512  }
  0x36   : > { %s497_s27 = scalar_lea.vmem %s1912_s0, %s1103_s2  ;;  %563 = vmatpush.bf16.msra.mxu1 %v1205_v4  ;;  %638 = vmatpush.bf16.msra.mxu2 %v1137_v14  ;;  %v1149_v22 = vor.u32 %v1212_v20, %v1146_v21  ;;  %v1120_v23 = vld [vmem:[%s1917_s5] sm:$0xf]  ;;  %v1209_v24 = vld [vmem:[%s1917_s5 + $0xc] sm:$0xf0]  ;;  %v1207_v25 = vld [vmem:[%s1917_s5 + $0x4] sm:$0xf]  ;;  %v887_v21 = vlaneseq }
  0x37   : > { %v499_v1 = vld [vmem:[%s497_s27] sm:$0xff]  ;;  %651 = vmatpush.bf16.msrb.mxu3 %v1141_v18  ;;  %664 = vmatpush.bf16.msra.mxu0 %v1145_v19  ;;  %v1121_v26 = vor.u32 %v1209_v24, %v1120_v23  ;;  %v1122_v27 = vld [vmem:[%s1917_s5 + $0x10] sm:$0xf0]  ;;  %v1128_v28 = vld [vmem:[%s1917_s5 + $0x8] sm:$0xf]  ;;  %v1598_v24 = vmov 1.0  }
  0x38   : > { %v503_v2 = vpack.c.bf16 %v499_v1, %v499_v1  ;;  %v1210_v29 = vld [vmem:[%s1917_s5 + $0x14] sm:$0xf0]  ;;  %v1125_v30 = vor.u32 %v1207_v25, %v1122_v27  ;;  %v1208_v32 = vld [vmem:[%s1917_s5 + $0xc] sm:$0xf]  ;;  %v1130_v33 = vld [vmem:[%s1917_s5 + $0x18] sm:$0xf0] }
  0x39   : > { %v1129_v31 = vor.u32 %v1210_v29, %v1128_v28  ;;  %v1133_v34 = vor.u32 %v1208_v32, %v1130_v33  ;;  %v1324_v35 = vld [vmem:[#allocation8] ss:$0 sm:$0xff]  ;;  %v579_v41 = vld [vmem:[%s1918_s6] sm:$0xf]  ;;  %v890_v23 = vand.u32 127, %v887_v21  ;;  %v1220_v27 = vld [vmem:[%s1919_s7 + $0x28] sm:$0xff] }
  0x3a   : > { %1108 = vmatmul.msk.bf16.vlgmr.msra.gmra.mxu3 %vm513_vm0, %v503_v2  ;;  %677 = vmatpush.bf16.msrb.mxu1 %v1149_v22  ;;  %v584_v42 = vperm.slane %v579_v41, 3  ;;  %v582_v46 = vperm.slane %v579_v41, 1  ;;  %v581_v48 = vperm.slane %v579_v41, 0  ;;  %v583_v2 = vperm.slane %v579_v41, 2  ;;  %v1222_v25 = vld [vmem:[%s1919_s7 + $0x38] sm:$0xff]  ;;  %v1219_v29 = vld [vmem:[%s1919_s7 + $0x20] sm:$0xff] }
  0x3b   : > { %639 = vmatpush.bf16.msra.mxu2 %v1121_v26  ;;  %652 = vmatpush.bf16.msrb.mxu3 %v1125_v30  ;;  %v888_v22 = vshrl.u32 %v887_v21, 7  ;;  %v1221_v26 = vld [vmem:[%s1919_s7 + $0x30] sm:$0xff]  ;;  %s1854_s27 = sand.u32 1, %s1581_s22   ;;  %s1201_s28 = sshll.u32 %s1685_s25, 3 }
  0x3c   : > { %665 = vmatpush.bf16.msra.mxu0 %v1129_v31  ;;  %s1102_s30 = sshll.u32 %s1854_s27, 3  ;;  %s946_s20 = scalar_lea.hbm %s1924_s12, %s1201_s28 }
  0x3d   : > { %vm891_vm8 = vcmp.eq.s32.totalorder %v888_v22, %v890_v23  ;;  %s493_s14 = scalar_lea.vmem [#allocation12], %s1102_s30  ;;  %s950_s17 = sshll.u32 %s946_s20, 4  ;;  %s951_s17 = int_to_ptr.hbm [resolvable:$true] %s950_s17 }
  0x3e   : > { %678 = vmatpush.bf16.msrb.mxu1 %v1133_v34  ;;  %s948_s16 = sshll.u32 %s493_s14, 4  ;;  %s923_s29 = scalar_lea.sflag [#allocation13], %s1854_s27  ;;  %s949_s16 = int_to_ptr.vmem [resolvable:$true] %s948_s16 }
  0x3f   : > { %s1497_s19 = sshra.s32 %s951_s17, 4  ;;  %s1503_s21 = scalar_lea.hbm %s1924_s12, 16  ;;  %s1498_s19 = int_to_ptr.hbm [resolvable:$true] %s1497_s19 }
  0x40   : > { %839 = vmatpush.bf16.msrb.mxu0 %v1222_v25  ;;  %s1499_s1 = scalar_lea.hbm %s1498_s19, 8  ;;  %p1504_p3 = scmp.lt.s32.totalorder %s1498_s19, %s1924_s12 }
  0x41   : > { %p1500_p0 = scmp.ne.s32.totalorder %s1498_s19, %s1499_s1  ;;  %p1505_p4 = scmp.lt.s32.totalorder %s1503_s21, %s1499_s1 }
  0x43   : > { %p1501_p1 = pnand %p1500_p0, %p1702_p5  ;;  %p1506_p7 = por %p1505_p4, %p1504_p3 }
  0x44   : > { %840 = vmatpush.bf16.msrb.mxu0 %v1221_v26 }
  0x45   : > { %p1502_p2 = pneg %p1501_p1 }
  0x47   : > { %p1507_p8 = pnand %p1506_p7, %p1502_p2 }
  0x48   : > { %841 = vmatpush.bf16.msrb.mxu0 %v1220_v27 }
  0x4c   : > { %842 = vmatpush.bf16.msrb.mxu0 %v1219_v29 }
  0xbd   : > { %v526_v6 = vpop.f32.mrf.mxu3 }
  0xbe   : > { %v527_v7 = vadd.f32 %v1323_v5, %v526_v6 }
  0xc0   : > { %v530_v8 = vmax.f32 %v527_v7, 0.0 }
  0xc2   : > { %v536_v9 = vpack.c.bf16 %v530_v8, %v530_v8 }
  0xc4   : > { %1117 = vmatmul.msk.bf16.vlgmr.msra.gmra.mxu1 %vm552_vm1, %v536_v9 }
  0xc5   : > { %v528_v10 = vpop.f32.mrf.mxu3 }
 0x141   : > { %v565_v36 = vpop.f32.mrf.mxu1 }
 0x142   : > { %v566_v37 = vadd.f32 %v1324_v35, %v565_v36 }
 0x144   : > { %v569_v38 = vmax.f32 %v566_v37, 0.0 }
 0x146   : > { %v570_v39 = vpack.c.bf16 %v569_v38, %v569_v38 }
 0x148   : > { %1150 = vmatmul.msk.bf16.vlgmr.msra.gmra.mxu2 %vm552_vm1, %v570_v39  ;;  %1151 = vmatmul.msk.bf16.vlgmr.msrb.gmra.mxu3 %vm552_vm1, %v570_v39 }
 0x149   : > { %1152 = vmatmul.msk.bf16.vlgmr.msra.gmra.mxu0 %vm552_vm1, %v570_v39  ;;  %1153 = vmatmul.msk.bf16.vlgmr.msrb.gmra.mxu1 %vm552_vm1, %v570_v39  ;;  %v567_v40 = vpop.f32.mrf.mxu1 }
 0x1c6   : > { %v667_v43 = vpop.f32.mrf.mxu0  ;;  %v680_v44 = vpop.f32.mrf.mxu1 }
 0x1c7   : > { %v681_v45 = vadd.f32 %v680_v44, %v584_v42  ;;  %v668_v7 = vadd.f32 %v667_v43, %v583_v2  ;;  %v1218_v42 = vld [vmem:[%s1919_s7 + $0x18] sm:$0xff]  ;;  %v1217_v43 = vld [vmem:[%s1919_s7 + $0x10] sm:$0xff]  ;;  %v1216_v44 = vld [vmem:[%s1919_s7 + $0x8] sm:$0xff] }
 0x1c8   : > { %843 = vmatpush.bf16.msrb.mxu0 %v1218_v42 }
 0x1c9   : > { %v1154_v47 = vmul.f32 -1.442695, %v681_v45  ;;  %v1215_v45 = vld [vmem:[%s1919_s7] sm:$0xff] }
 0x1cb   : > { %1325 = vpow2.f32 %v1154_v47  ;;  %v641_v49 = vpop.f32.mrf.mxu2  ;;  %v654_v50 = vpop.f32.mrf.mxu3 }
 0x1cc   : > { %v655_v51 = vadd.f32 %v654_v50, %v582_v46  ;;  %v642_v52 = vadd.f32 %v641_v49, %v581_v48  ;;  %844 = vmatpush.bf16.msrb.mxu0 %v1217_v43  ;;  %v1224_v46 = vld [vmem:[#allocation10 + $0x8] sm:$0xff] }
 0x1cd   : > { %879 = vmatpush.bf16.msra.mxu1 %v1224_v46 }
 0x1ce   : > { %v705_v53 = vpack.c.bf16 %v655_v51, %v655_v51  ;;  %v669_v54 = vpop.f32.mrf.mxu0  ;;  %v682_v55 = vpop.f32.mrf.mxu1  ;;  %v684_v57 = vmul.f32 0.088388346, %v642_v52 }
 0x1d0   : > { %713 = vmatpush.bf16.xpose.msrb.mxu2 %v705_v53  ;;  %v704_v61 = vpack.c.bf16 %v684_v57, %v684_v57  ;;  %845 = vmatpush.bf16.msrb.mxu0 %v1216_v44  ;;  %v1223_v57 = vld [vmem:[#allocation10] sm:$0xff] }
 0x1d1   : > { %v1326_v56 = vpop.eup %1325  ;;  %880 = vmatpush.bf16.msra.mxu1 %v1223_v57 }
 0x1d2   : > { %v688_v58 = vadd.f32 1.0, %v1326_v56 }
 0x1d3   : > { %v643_v59 = vpop.f32.mrf.mxu2  ;;  %v656_v60 = vpop.f32.mrf.mxu3 }
 0x1d4   : > { %1327 = vrcp.f32 %v688_v58  ;;  %v700_v1 = vand.u32 2147483648, %v688_v58  ;;  %v698_v4 = vand.u32 2147483647, %v688_v58  ;;  %vm694_vm3 = vweird.f32 %v688_v58  ;;  %846 = vmatpush.bf16.msrb.mxu0 %v1215_v45 }
 0x1d6   : > { %v701_v6 = vor.u32 1.1754944e-38, %v700_v1  ;;  %vm699_vm5 = vcmp.eq.f32.partialorder %v698_v4, 8.507059e+37 }
 0x1d7   : > { %714 = vmatmul.bf16.vlgmr.msrb.gmra.mxu2 %v704_v61 }
 0x1d8   : > { %1198 = vmatpush.msk.msra.mxu2 %vm891_vm8, %v1598_v24 }
 0x1da   : > { %v1328_v62 = vpop.eup %1327 }
 0x1db   : > { %v690_v63 = vmul.f32 %v1328_v62, %v688_v58  ;;  %vm695_vm2 = vweird.f32 %v1328_v62  ;;  %v790_v58 = vld [vmem:[%s1920_s8] sm:$0x1] }
 0x1dc   : > { %vm696_vm4 = vmor %vm694_vm3, %vm695_vm2 }
 0x1dd   : > { %v691_v0 = vsub.f32 1.0, %v690_v63 }
 0x1df   : > { %v692_v3 = vmul.f32 %v1328_v62, %v691_v0 }
 0x1e1   : > { %v693_v5 = vadd.f32 %v1328_v62, %v692_v3 }
 0x1e3   : > { %v697_v8 = vsel %vm696_vm4, %v1328_v62, %v693_v5 }
 0x1e4   : > { %v702_v9 = vsel %vm699_vm5, %v701_v6, %v697_v8 }
 0x1e5   : > { %v744_v10 = vmul.f32 %v702_v9, %v668_v7 }
 0x1e7   : > { %v745_v11 = vpack.c.bf16 %v744_v10, %v744_v10 }
 0x1e9   : > { %v752_v12 = vsel %vm750_vm6, %v745_v11, 0 }
 0x1ea   : > { %761 = vmatpush.bf16.msra.mxu3 %v752_v12 }
 0x25a   : > { %v715_v13 = vpop.f32.mrf.mxu2 }
 0x25b   : > { %v720_v14 = vsel %vm719_vm7, %v715_v13, -inf }
 0x25c   : > { %721 = vmax.xlane.f32.xlu0 %v720_v14 }
 0x262   : > { %v717_v15 = vpop.f32.mrf.mxu2 }
 0x2cf   : > { %v722_v16 = vpop.xlane.xlu0 %721 }
 0x2d0   : > { %v723_v17 = vsub.f32 %v715_v13, %v722_v16 }
 0x2d2   : > { %v724_v18 = vmul.f32 1.442695, %v723_v17 }
 0x2d4   : > { %1329 = vpow2.f32 %v724_v18 }
 0x2da   : > { %v1330_v19 = vpop.eup %1329 }
 0x2db   : > { %v726_v20 = vsel %vm719_vm7, %v1330_v19, 0.0 }
 0x2dc   : > { %727 = vadd.xlane.f32.xlu0 %v726_v20 }
 0x34f   : > { %v728_v28 = vpop.xlane.xlu0 %727 }
 0x350   : > { %1331 = vrcp.f32 %v728_v28  ;;  %v740_v33 = vand.u32 2147483648, %v728_v28  ;;  %v738_v35 = vand.u32 2147483647, %v728_v28  ;;  %vm734_vm10 = vweird.f32 %v728_v28 }
 0x352   : > { %v741_v37 = vor.u32 1.1754944e-38, %v740_v33  ;;  %vm739_vm12 = vcmp.eq.f32.partialorder %v738_v35, 8.507059e+37 }
 0x356   : > { %v1332_v30 = vpop.eup %1331 }
 0x357   : > { %v730_v31 = vmul.f32 %v1332_v30, %v728_v28  ;;  %vm735_vm9 = vweird.f32 %v1332_v30 }
 0x358   : > { %vm736_vm11 = vmor %vm734_vm10, %vm735_vm9 }
 0x359   : > { %v731_v32 = vsub.f32 1.0, %v730_v31 }
 0x35b   : > { %v732_v34 = vmul.f32 %v1332_v30, %v731_v32 }
 0x35d   : > { %v733_v36 = vadd.f32 %v1332_v30, %v732_v34 }
 0x35f   : > { %v737_v38 = vsel %vm736_vm11, %v1332_v30, %v733_v36 }
 0x360   : > { %v742_v39 = vsel %vm739_vm12, %v741_v37, %v737_v38 }
 0x361   : > { %v743_v40 = vmul.f32 %v1330_v19, %v742_v39 }
 0x363   : > { %v746_v41 = vpack.c.bf16 %v743_v40, %v743_v40  ;;  %1199 = vmatmul.msk.f32.vlgmr.msra.gmra.mxu2 %vm719_vm7, %v743_v40 }
 0x365   : > { %1155 = vmatmul.msk.bf16.vlgmr.msra.gmra.mxu3 %vm719_vm7, %v746_v41 }
 0x3e6   : > { %v914_v47 = vpop.f32.mrf.mxu2 }
 0x3e7   : > { %917 = vst [vmem:[%s493_s14] sm:$0xff] %v914_v47 }
 0x3e8   : > { %v763_v48 = vpop.f32.mrf.mxu3 }
 0x3e9   : > { %v767_v49 = vrot.slane %v763_v48, 4 }
 0x3eb   : > { %v768_v50 = vadd.f32 %v767_v49, %v763_v48 }
 0x3ed   : > { %v769_v51 = vrot.slane %v768_v50, 2 }
 0x3ef   : > { %v770_v52 = vadd.f32 %v769_v51, %v768_v50 }
 0x3f0   : > { %v765_v53 = vpop.f32.mrf.mxu3 }
 0x3f1   : > { %v771_v54 = vrot.slane %v770_v52, 1 }
 0x3f3   : > { %v772_v55 = vadd.f32 %v771_v54, %v770_v52 }
 0x3f5   : > { %v773_v56 = vpack.c.bf16 %v772_v55, %v772_v55 }
 0x3f7   : > { %847 = vmatmul.bf16.vlgmr.msrb.gmra.mxu0 %v773_v56 }
 0x474   : > { %v848_v59 = vpop.f32.mrf.mxu0 }
 0x475   : > { %v849_v60 = vadd.f32 %v848_v59, %v790_v58 }
 0x477   : > { %v852_v61 = vpack.c.bf16 %v849_v60, %v849_v60 }
 0x479   : > { %1196 = vmatmul.msk.bf16.vlgmr.msra.gmra.mxu1 %vm552_vm1, %v852_v61 }
 0x47c   : > { %v850_v62 = vpop.f32.mrf.mxu0 }
 0x47d   : > { %1510 = shalt.err (!%p1507_p8)
}
 0x47e   : > { %1246 = dma.vmem_to_hbm [thread:$0]  (%p1702_p5), %s949_s16, 128, %s951_s17, %s923_s29   ;;  %v857_v63 = vld [vmem:[%s1922_s10] sm:$0x1] }
 0x47f   : > { %s932_s28 = scalar_lea.hbm %s1923_s11, %s1685_s25  ;;  %s486_s20 = scalar_lea.vmem [#allocation11], %s1854_s27 }
 0x480   : > { %s934_s19 = sshll.u32 %s486_s20, 4  ;;  %s936_s1 = sshll.u32 %s932_s28, 4  ;;  %s935_s19 = int_to_ptr.vmem [resolvable:$true] %s934_s19  ;;  %s937_s1 = int_to_ptr.hbm [resolvable:$true] %s936_s1 }
 0x481   : > { %s919_s2 = scalar_lea.sflag [#allocation4], %s1854_s27  ;;  %s1525_s4 = sshra.s32 %s937_s1, 4  ;;  %s1526_s4 = int_to_ptr.hbm [resolvable:$true] %s1525_s4 }
 0x482   : > { %s1527_s16 = scalar_lea.hbm %s1526_s4, 1  ;;  %s1531_s29 = scalar_lea.hbm %s1923_s11, 2 }
 0x483   : > { %p1528_p9 = scmp.ne.s32.totalorder %s1526_s4, %s1527_s16  ;;  %p1532_p12 = scmp.lt.s32.totalorder %s1526_s4, %s1923_s11 }
 0x484   : > { %p1533_p13 = scmp.lt.s32.totalorder %s1531_s29, %s1527_s16 }
 0x485   : > { %p1529_p10 = pnand %p1528_p9, %p1702_p5 }
 0x486   : > { %p1534_p0 = por %p1533_p13, %p1532_p12 }
 0x487   : > { %p1530_p11 = pneg %p1529_p10 }
 0x489   : > { %p1535_p1 = pnand %p1534_p0, %p1530_p11 }
 0x4f6   : > { %v882_v0 = vpop.f32.mrf.mxu1 }
 0x4f7   : > { %v883_v1 = vadd.f32 %v882_v0, %v857_v63 }
 0x4f9   : > { %886 = vst [vmem:[%s486_s20] sm:$0x1] %v883_v1 }
 0x4fa   : > { %1538 = shalt.err (!%p1535_p1)
}
 0x4fb   : > { %1245 = dma.vmem_to_hbm [thread:$0]  (%p1702_p5), %s935_s19, 16, %s937_s1, %s919_s2  }
 0x4fe   : > { %v884_v2 = vpop.f32.mrf.mxu1 }
 0x4ff PF: > { %s1945_s27 = sld [smem:[#allocation19_spill]]  ;;  %p1282_p2 = scmp.ge.s32.totalorder %s1589_s24, 2 }
 0x501   : > { %p1266_p3 = pnand %p1282_p2, %p1706_p6 }
 0x503   : > { %p1267_p4 = pneg %p1266_p3 }
 0x505   : > { %s962_s15 = sand.u32 1, %s1945_s27  }
 0x506   : > { %s963_s26 = scalar_lea.sflag [#allocation4], %s962_s15 }
 0x507   : > { %1568 = dma.done.wait (%p1267_p4), %s963_s26, 16  }
 0x508   : > { %1570 = vsyncadd (%p1267_p4), %s963_s26, 4294967280  ;;  %s972_s28 = scalar_lea.sflag [#allocation13], %s962_s15 }
 0x509   : > { %1572 = dma.done.wait (%p1267_p4), %s972_s28, 128  }
 0x50a   : > { %1574 = vsyncadd (%p1267_p4), %s972_s28, 4294967168  ;;  %s1947_s24 = sld [smem:[#allocation21_spill]]  ;;  %s1950_s21 = smov %s1581_s22 }
 0x50b   : > { %s1948_s13 = sld [smem:[#allocation20_spill]] }
 0x50c   : > { %s1949_s23 = sld [smem:[#allocation22_spill]] }
 0x510   : > { %p29_p5 = scmp.ge.s32.totalorder %s1947_s24, 4  }
 0x511   : > { %s1951_s22 = smov %s1948_s13 }
 0x512   :  { %31 = sbr.rel (!%p29_p5) target bundleno = 12 (0xc), region = 137 }
 0x517   :  { %978 = vsyncpa [#allocation3], 1 }
 0x518   :  { %980 = vsyncpa [#allocation3 + $0x1], 1 }
 0x519   :  { %981 = vsyncpa [#allocation6], 1 }
 0x51a   :  { %982 = vsyncpa [#allocation9], 1 }
 0x51b   :  { %983 = vsyncpa [#allocation4], 1 }
 0x51c   :  { %985 = vsyncpa [#allocation4 + $0x1], 1 }
 0x51d   :  { %986 = vsyncpa [#allocation13], 1 }
 0x51e   :  { %988 = vsyncpa [#allocation13 + $0x1], 1 }

</bundles_post_ra>
